<compile_context>
chip_gen: v6e
topology: v6e:2x2x1
jax: 0.10.0
libtpu: 0.0.40
codegen_flags: <defaults>
</compile_context>

<pallas_src>
import math

import jax
import jax.numpy as jnp
from jax.experimental import pallas as pl
from jax.experimental.pallas import tpu as pltpu


def _encoder_kernel(x_ref, w1_ref, b1_ref, wh_ref, bh_ref, out_ref):
    # x_ref : (TB, D)        bf16
    # w1_ref: (D, 16)        bf16   (resident)
    # b1_ref: (1, 16)        f32    (resident)
    # wh_ref: (16, OUT_PAD)  f32    (resident, Wmu||Wlv zero-padded to lanes)
    # bh_ref: (1, OUT_PAD)   f32    (resident)
    # out_ref: (TB, OUT_PAD) f32    (lane-dense store)
    h = jnp.dot(x_ref[...], w1_ref[...], preferred_element_type=jnp.float32)
    h = jnp.maximum(h + b1_ref[...], 0.0)                       # bias + ReLU in f32
    out_ref[...] = (
        jnp.dot(h, wh_ref[...], preferred_element_type=jnp.float32) + bh_ref[...]
    )


def _choose_tb(batch, d, out_pad):
    """Largest batch tile (multiple of 8, <=512) whose double-buffered x/out
    tiles stay within a ~16 MiB budget (safe for v7x's 32 MiB scoped VMEM)."""
    budget = 16 * 1024 * 1024
    per_row = 2 * (d * 2 + out_pad * 4)          # 2x-buffered bf16 x row + f32 out row
    tb = max(8, min(512, budget // max(per_row, 1)))
    tb = (tb // 8) * 8
    b_rounded = ((batch + 7) // 8) * 8
    return max(8, min(tb, b_rounded))


def variational_encoder(x, params):
    """x: (B, C, H, W) float32. Returns (mu, log_var), each (B, latent)."""
    w1, b1, wmu, bmu, wlv, blv = params
    B = x.shape[0]
    x2d = x.reshape(B, -1).astype(jnp.float32)   # torch.flatten(x, start_dim=1)
    D = x2d.shape[1]
    Hh = w1.shape[1]                             # 16
    L = wmu.shape[1]                             # latent_dims
    out_pad = max(128, ((2 * L + 127) // 128) * 128)

    # --- fuse + lane-pad the two head layers: one matmul, lane-dense output ---
    wh = jnp.zeros((Hh, out_pad), jnp.float32)
    wh = wh.at[:, :L].set(wmu).at[:, L:2 * L].set(wlv)
    bh = jnp.zeros((1, out_pad), jnp.float32)
    bh = bh.at[:, :L].set(bmu).at[:, L:2 * L].set(blv)

    # --- batch tiling (pad B so there is no partial tail tile) ---
    TB = _choose_tb(B, D, out_pad)
    n_tiles = -(-B // TB)
    B_pad = n_tiles * TB

    x_bf = x2d.astype(jnp.bfloat16)              # only large operand -> bf16
    if B_pad != B:
        x_bf = jnp.zeros((B_pad, D), jnp.bfloat16).at[:B].set(x_bf)
    w1_bf = w1.astype(jnp.bfloat16)
    b1_f32 = b1.astype(jnp.float32)

    # --- VMEM budget / cost hints ---
    vmem_need = (2 * TB * D * 2 +                # double-buffered x tiles (bf16)
                 2 * TB * out_pad * 4 +          # double-buffered out tiles (f32)
                 2 * D * Hh * 2 +                # resident w1 (bf16, buffered)
                 2 * (Hh + Hh * out_pad + out_pad) * 4)
    vmem_limit = int(min(64 * 1024 * 1024, max(2 * vmem_need, 8 * 1024 * 1024)))
    flops = 2 * B_pad * D * Hh + 2 * B_pad * Hh * out_pad
    bytes_accessed = (B_pad * D * 2 + D * Hh * 2 +
                      (Hh + Hh * out_pad + out_pad) * 4 + B_pad * out_pad * 4)

    out = pl.pallas_call(
        _encoder_kernel,
        out_shape=jax.ShapeDtypeStruct((B_pad, out_pad), jnp.float32),
        grid_spec=pltpu.PrefetchScalarGridSpec(
            num_scalar_prefetch=0,
            grid=(n_tiles,),
            in_specs=[
                pl.BlockSpec((TB, D), lambda i: (i, 0)),         # x tile (pipelined)
                pl.BlockSpec((D, Hh), lambda i: (0, 0)),         # w1 (resident)
                pl.BlockSpec((1, Hh), lambda i: (0, 0)),         # b1 (resident)
                pl.BlockSpec((Hh, out_pad), lambda i: (0, 0)),   # fused head W
                pl.BlockSpec((1, out_pad), lambda i: (0, 0)),    # fused head b
            ],
            out_specs=pl.BlockSpec((TB, out_pad), lambda i: (i, 0)),
        ),
        compiler_params=pltpu.CompilerParams(
            dimension_semantics=("parallel",),
            vmem_limit_bytes=vmem_limit,
        ),
        cost_estimate=pl.CostEstimate(
            flops=flops, transcendentals=0, bytes_accessed=bytes_accessed),
    )(x_bf, w1_bf, b1_f32, wh, bh)

    mu = out[:B, :L]
    log_var = out[:B, L:2 * L]
    return mu, log_var


def init_params(key, input_dims, latent_dims):
    """Deterministic init mimicking nn.Linear default (uniform +/- 1/sqrt(fan_in)).
    Weights are stored transposed: (in_features, out_features)."""
    ks = jax.random.split(key, 6)

    def lin(kw, kb, fan_in, fan_out):
        bound = 1.0 / math.sqrt(fan_in)
        w = jax.random.uniform(kw, (fan_in, fan_out), jnp.float32, -bound, bound)
        b = jax.random.uniform(kb, (1, fan_out), jnp.float32, -bound, bound)
        return w, b

    w1, b1 = lin(ks[0], ks[1], input_dims, 16)
    wmu, bmu = lin(ks[2], ks[3], 16, latent_dims)
    wlv, blv = lin(ks[4], ks[5], 16, latent_dims)
    return (w1, b1, wmu, bmu, wlv, blv)


if __name__ == "__main__":
    key = jax.random.PRNGKey(0)
    kx, kp = jax.random.split(key)

    # Small shapes consistent with the module: x is (B, C, H, W), flattened
    # inside forward. input_dims = C*H*W.
    B, C, H, W = 2, 4, 16, 16
    latent_dims = 8
    input_dims = C * H * W

    x = jax.random.normal(kx, (B, C, H, W), jnp.float32)
    params = init_params(kp, input_dims, latent_dims)

    mu, log_var = variational_encoder(x, params)
    jax.block_until_ready((mu, log_var))

    w1, b1, wmu, bmu, wlv, blv = params
    x2d = x.reshape(B, -1)

    # Reference mirroring the kernel's bf16-input / f32-accumulate matmul.
    h_bf = jnp.maximum(
        jnp.dot(x2d.astype(jnp.bfloat16), w1.astype(jnp.bfloat16),
                preferred_element_type=jnp.float32) + b1, 0.0)
    mu_ref = h_bf @ wmu + bmu
    lv_ref = h_bf @ wlv + blv
    assert jnp.allclose(mu, mu_ref, atol=2e-3, rtol=2e-3), "mu mismatch (bf16 ref)"
    assert jnp.allclose(log_var, lv_ref, atol=2e-3, rtol=2e-3), "log_var mismatch (bf16 ref)"

    # Loose check against the original full-f32 module semantics.
    h_f32 = jnp.maximum(x2d @ w1 + b1, 0.0)
    assert jnp.allclose(mu, h_f32 @ wmu + bmu, atol=5e-2), "mu far from f32 ref"
    assert jnp.allclose(log_var, h_f32 @ wlv + blv, atol=5e-2), "log_var far from f32 ref"
    assert mu.shape == (B, latent_dims) and log_var.shape == (B, latent_dims)

    print("KERNEL_OK")
</pallas_src>

<mosaic_0001>
module attributes {stable_mosaic.version = 11 : i64} {
  func.func @_encoder_kernel(%arg0: i32, %arg1: memref<8x1024xbf16, #tpu.memory_space<vmem>>, %arg2: memref<1024x16xbf16, #tpu.memory_space<vmem>>, %arg3: memref<1x16xf32, #tpu.memory_space<vmem>>, %arg4: memref<16x128xf32, #tpu.memory_space<vmem>>, %arg5: memref<1x128xf32, #tpu.memory_space<vmem>>, %arg6: memref<8x128xf32, #tpu.memory_space<vmem>>) attributes {dimension_semantics = [#tpu.dimension_semantics<parallel>], iteration_bounds = array<i64: 1>, scalar_prefetch = 0 : i64, scratch_operands = 0 : i64, tpu.core_type = #tpu.core_type<tc>, window_params = [{transform_indices = @transform_0, window_bounds = array<i64: 8, 1024>}, {pipeline_mode = #tpu.pipeline_mode<synchronous>, transform_indices = @transform_1, window_bounds = array<i64: 1024, 16>}, {pipeline_mode = #tpu.pipeline_mode<synchronous>, transform_indices = @transform_2, window_bounds = array<i64: 1, 16>}, {pipeline_mode = #tpu.pipeline_mode<synchronous>, transform_indices = @transform_3, window_bounds = array<i64: 16, 128>}, {pipeline_mode = #tpu.pipeline_mode<synchronous>, transform_indices = @transform_4, window_bounds = array<i64: 1, 128>}, {transform_indices = @transform_5, window_bounds = array<i64: 8, 128>}]} {
    %c0 = arith.constant 0 : index
    %c0_0 = arith.constant 0 : index
    %0 = vector.load %arg1[%c0, %c0_0] : memref<8x1024xbf16, #tpu.memory_space<vmem>>, vector<8x1024xbf16>
    %c0_1 = arith.constant 0 : index
    %c0_2 = arith.constant 0 : index
    %1 = vector.load %arg2[%c0_1, %c0_2] : memref<1024x16xbf16, #tpu.memory_space<vmem>>, vector<1024x16xbf16>
    %cst = arith.constant dense<0.000000e+00> : vector<8x16xf32>
    %2 = tpu.matmul %0, %1, %cst {dimension_numbers = #tpu.dot_dimension_numbers<[1], [0], [0], [1], [0, 0, 1, 1], [], []>} : vector<8x1024xbf16>, vector<1024x16xbf16>, vector<8x16xf32> -> vector<8x16xf32>
    %c0_3 = arith.constant 0 : index
    %c0_4 = arith.constant 0 : index
    %3 = vector.load %arg3[%c0_3, %c0_4] : memref<1x16xf32, #tpu.memory_space<vmem>>, vector<1x16xf32>
    %4 = vector.broadcast %3 : vector<1x16xf32> to vector<8x16xf32>
    %5 = arith.addf %2, %4 : vector<8x16xf32>
    %cst_5 = arith.constant 0.000000e+00 : f32
    %6 = vector.broadcast %cst_5 : f32 to vector<8x16xf32>
    %7 = arith.maximumf %5, %6 : vector<8x16xf32>
    %c0_6 = arith.constant 0 : index
    %c0_7 = arith.constant 0 : index
    %8 = vector.load %arg4[%c0_6, %c0_7] : memref<16x128xf32, #tpu.memory_space<vmem>>, vector<16x128xf32>
    %cst_8 = arith.constant dense<0.000000e+00> : vector<8x128xf32>
    %9 = tpu.matmul %7, %8, %cst_8 {dimension_numbers = #tpu.dot_dimension_numbers<[1], [0], [0], [1], [0, 0, 1, 1], [], []>} : vector<8x16xf32>, vector<16x128xf32>, vector<8x128xf32> -> vector<8x128xf32>
    %c0_9 = arith.constant 0 : index
    %c0_10 = arith.constant 0 : index
    %10 = vector.load %arg5[%c0_9, %c0_10] : memref<1x128xf32, #tpu.memory_space<vmem>>, vector<1x128xf32>
    %11 = vector.broadcast %10 : vector<1x128xf32> to vector<8x128xf32>
    %12 = arith.addf %9, %11 : vector<8x128xf32>
    %c0_11 = arith.constant 0 : index
    %c0_12 = arith.constant 0 : index
    %13 = vector.load %arg6[%c0_11, %c0_12] : memref<8x128xf32, #tpu.memory_space<vmem>>, vector<8x128xf32>
    tpu.vector_store %arg6[%c0_11, %c0_12], %12 {strides = array<i32>} : memref<8x128xf32, #tpu.memory_space<vmem>>, vector<8x128xf32>,
    return
  }
  func.func @transform_0(%arg0: i32) -> (i32, i32) {
    %c0_i32 = arith.constant 0 : i32
    %c0_i32_0 = arith.constant 0 : i32
    return %arg0, %c0_i32 : i32, i32
  }
  func.func @transform_1(%arg0: i32) -> (i32, i32) {
    %c0_i32 = arith.constant 0 : i32
    %c0_i32_0 = arith.constant 0 : i32
    %c0_i32_1 = arith.constant 0 : i32
    return %c0_i32, %c0_i32_0 : i32, i32
  }
  func.func @transform_2(%arg0: i32) -> (i32, i32) {
    %c0_i32 = arith.constant 0 : i32
    %c0_i32_0 = arith.constant 0 : i32
    %c0_i32_1 = arith.constant 0 : i32
    return %c0_i32, %c0_i32_0 : i32, i32
  }
  func.func @transform_3(%arg0: i32) -> (i32, i32) {
    %c0_i32 = arith.constant 0 : i32
    %c0_i32_0 = arith.constant 0 : i32
    %c0_i32_1 = arith.constant 0 : i32
    return %c0_i32, %c0_i32_0 : i32, i32
  }
  func.func @transform_4(%arg0: i32) -> (i32, i32) {
    %c0_i32 = arith.constant 0 : i32
    %c0_i32_0 = arith.constant 0 : i32
    %c0_i32_1 = arith.constant 0 : i32
    return %c0_i32, %c0_i32_0 : i32, i32
  }
  func.func @transform_5(%arg0: i32) -> (i32, i32) {
    %c0_i32 = arith.constant 0 : i32
    %c0_i32_0 = arith.constant 0 : i32
    return %arg0, %c0_i32 : i32, i32
  }
}

</mosaic_0001>

<bundles_post_ra>
// kernel: tpu_custom_call.1
= control target key start
LH: loop header
LB: loop body
LE: loop exit
PB: predicated region body
PF: predicated region fallthrough
CT: control target
= control target key end

     0   :  { %s1354_s0 = inlined_call_operand.vmem [shape: bf16[8,1024], index: 0, kind: input, shape index: {}]   ;;  %s1355_s1 = inlined_call_operand.vmem [shape: bf16[1024,16], index: 1, kind: input, shape index: {}]   ;;  %s1356_s2 = inlined_call_operand.vmem [shape: f32[1,16], index: 2, kind: input, shape index: {}]   ;;  %s1357_s3 = inlined_call_operand.vmem [shape: f32[16,128], index: 3, kind: input, shape index: {}]   ;;  %s1358_s4 = inlined_call_operand.vmem [shape: f32[1,128], index: 4, kind: input, shape index: {}]   ;;  %s1359_s5 = inlined_call_operand.hbm [shape: f32[8,128], index: 5, kind: output, shape index: {}]  }
   0x1   :  { %v1008_v0 = vld [vmem:[%s1355_s1 + $0x78] sm:$0xff]   ;;  %v1012_v4 = vld [vmem:[%s1355_s1 + $0x70] sm:$0xff]   ;;  %v1016_v8 = vld [vmem:[%s1355_s1 + $0x68] sm:$0xff]  }
   0x2   :  { %v1009_v1 = vld [vmem:[%s1355_s1 + $0xf8] sm:$0xff]   ;;  %907 = vmatprep.subr.bf16.mxu0 %v1008_v0  ;;  %v1013_v5 = vld [vmem:[%s1355_s1 + $0xf0] sm:$0xff]   ;;  %v1017_v9 = vld [vmem:[%s1355_s1 + $0xe8] sm:$0xff]  }
   0x3   :  { %v1010_v2 = vld [vmem:[%s1355_s1 + $0x38] sm:$0xff]   ;;  %929 = vmatprep.subr.bf16.mxu1 %v1009_v1  ;;  %v1014_v6 = vld [vmem:[%s1355_s1 + $0x30] sm:$0xff]   ;;  %v1018_v10 = vld [vmem:[%s1355_s1 + $0x28] sm:$0xff]  }
   0x4   :  { %v1011_v3 = vld [vmem:[%s1355_s1 + $0xb8] sm:$0xff]   ;;  %908 = vmatpush3.bf16.msra.mxu0 %v1010_v2  ;;  %v1015_v7 = vld [vmem:[%s1355_s1 + $0xb0] sm:$0xff]   ;;  %v1019_v11 = vld [vmem:[%s1355_s1 + $0xa8] sm:$0xff]  }
   0x5   :  { %930 = vmatpush3.bf16.msra.mxu1 %v1011_v3  ;;  %909 = vmatprep.subr.bf16.mxu0 %v1012_v4  ;;  %v1020_v12 = vld [vmem:[%s1355_s1 + $0x60] sm:$0xff]   ;;  %v1024_v16 = vld [vmem:[%s1355_s1 + $0x58] sm:$0xff]   ;;  %v1028_v20 = vld [vmem:[%s1355_s1 + $0x50] sm:$0xff]  }
   0x6   :  { %931 = vmatprep.subr.bf16.mxu1 %v1013_v5  ;;  %v1021_v13 = vld [vmem:[%s1355_s1 + $0xe0] sm:$0xff]   ;;  %v1025_v17 = vld [vmem:[%s1355_s1 + $0xd8] sm:$0xff]   ;;  %v1029_v21 = vld [vmem:[%s1355_s1 + $0xd0] sm:$0xff]  }
   0x7   :  { %v1022_v14 = vld [vmem:[%s1355_s1 + $0x20] sm:$0xff]   ;;  %v1026_v18 = vld [vmem:[%s1355_s1 + $0x18] sm:$0xff]   ;;  %v1030_v22 = vld [vmem:[%s1355_s1 + $0x10] sm:$0xff]  }
   0x8   :  { %910 = vmatpush3.bf16.msra.mxu0 %v1014_v6  ;;  %v1023_v15 = vld [vmem:[%s1355_s1 + $0xa0] sm:$0xff]   ;;  %v1027_v19 = vld [vmem:[%s1355_s1 + $0x98] sm:$0xff]   ;;  %v1031_v23 = vld [vmem:[%s1355_s1 + $0x90] sm:$0xff]  }
   0x9   :  { %932 = vmatpush3.bf16.msra.mxu1 %v1015_v7  ;;  %911 = vmatprep.subr.bf16.mxu0 %v1016_v8  ;;  %v1032_v24 = vld [vmem:[%s1355_s1 + $0x48] sm:$0xff]   ;;  %v1036_v28 = vld [vmem:[%s1355_s1 + $0x40] sm:$0xff]   ;;  %v1044_v38 = vld [vmem:[%s1355_s1 + $0x178] sm:$0xff]  }
   0xa   :  { %933 = vmatprep.subr.bf16.mxu1 %v1017_v9  ;;  %v1033_v25 = vld [vmem:[%s1355_s1 + $0xc8] sm:$0xff]   ;;  %v1037_v29 = vld [vmem:[%s1355_s1 + $0xc0] sm:$0xff]   ;;  %v1045_v39 = vld [vmem:[%s1355_s1 + $0x1f8] sm:$0xff]  }
   0xb   :  { %v1034_v26 = vld [vmem:[%s1355_s1 + $0x8] sm:$0xff]   ;;  %v1038_v30 = vld [vmem:[%s1355_s1] sm:$0xff]   ;;  %v1046_v40 = vld [vmem:[%s1355_s1 + $0x138] sm:$0xff]  }
   0xc   :  { %912 = vmatpush3.bf16.msra.mxu0 %v1018_v10  ;;  %v1035_v27 = vld [vmem:[%s1355_s1 + $0x88] sm:$0xff]   ;;  %v1039_v31 = vld [vmem:[%s1355_s1 + $0x80] sm:$0xff]   ;;  %v1047_v41 = vld [vmem:[%s1355_s1 + $0x1b8] sm:$0xff]  }
   0xd   :  { %934 = vmatpush3.bf16.msra.mxu1 %v1019_v11  ;;  %913 = vmatprep.subr.bf16.mxu0 %v1020_v12  ;;  %v22_v32 = vld [vmem:[%s1354_s0] sm:$0xff]  ;;  %v23_v33 = vld [vmem:[%s1354_s0 + $0x8] sm:$0xff]  ;;  %v1048_v42 = vld [vmem:[%s1355_s1 + $0x170] sm:$0xff]  }
   0xe   :  { %935 = vmatprep.subr.bf16.mxu1 %v1021_v13  ;;  %v833_v34 = vcombine.low %v22_v32, %v22_v32  ;;  %v834_v35 = vcombine.high %v22_v32, %v22_v32  ;;  %v835_v36 = vcombine.low %v23_v33, %v23_v33  ;;  %v836_v37 = vcombine.high %v23_v33, %v23_v33  ;;  %v1049_v43 = vld [vmem:[%s1355_s1 + $0x1f0] sm:$0xff]   ;;  %v1052_v46 = vld [vmem:[%s1355_s1 + $0x168] sm:$0xff]   ;;  %v1056_v50 = vld [vmem:[%s1355_s1 + $0x160] sm:$0xff]  }
   0xf   :  { %v1050_v44 = vld [vmem:[%s1355_s1 + $0x130] sm:$0xff]   ;;  %v1053_v47 = vld [vmem:[%s1355_s1 + $0x1e8] sm:$0xff]   ;;  %v1057_v51 = vld [vmem:[%s1355_s1 + $0x1e0] sm:$0xff]  }
  0x10   :  { %914 = vmatpush3.bf16.msra.mxu0 %v1022_v14  ;;  %605 = vmatprep.mubr.bf16.mxu0 %v834_v35  ;;  %v1051_v45 = vld [vmem:[%s1355_s1 + $0x1b0] sm:$0xff]   ;;  %v1054_v48 = vld [vmem:[%s1355_s1 + $0x128] sm:$0xff]   ;;  %v1058_v52 = vld [vmem:[%s1355_s1 + $0x120] sm:$0xff]  }
  0x11   :  { %936 = vmatpush3.bf16.msra.mxu1 %v1023_v15  ;;  %915 = vmatprep.subr.bf16.mxu0 %v1024_v16  ;;  %v1055_v49 = vld [vmem:[%s1355_s1 + $0x1a8] sm:$0xff]   ;;  %v1059_v53 = vld [vmem:[%s1355_s1 + $0x1a0] sm:$0xff]   ;;  %v1060_v54 = vld [vmem:[%s1355_s1 + $0x158] sm:$0xff]  }
  0x12   :  { %937 = vmatprep.subr.bf16.mxu1 %v1025_v17  ;;  %645 = vmatprep.mubr.bf16.mxu1 %v836_v37  ;;  %v1061_v55 = vld [vmem:[%s1355_s1 + $0x1d8] sm:$0xff]   ;;  %v1064_v58 = vld [vmem:[%s1355_s1 + $0x150] sm:$0xff]   ;;  %v1068_v62 = vld [vmem:[%s1355_s1 + $0x148] sm:$0xff]  }
  0x13   :  { %v1062_v56 = vld [vmem:[%s1355_s1 + $0x118] sm:$0xff]   ;;  %v1065_v59 = vld [vmem:[%s1355_s1 + $0x1d0] sm:$0xff]   ;;  %v1069_v63 = vld [vmem:[%s1355_s1 + $0x1c8] sm:$0xff]  }
  0x14   :  { %916 = vmatpush3.bf16.msra.mxu0 %v1026_v18  ;;  %v1063_v57 = vld [vmem:[%s1355_s1 + $0x198] sm:$0xff]   ;;  %v1066_v60 = vld [vmem:[%s1355_s1 + $0x110] sm:$0xff]   ;;  %v1070_v0 = vld [vmem:[%s1355_s1 + $0x108] sm:$0xff]  }
  0x15   :  { %938 = vmatpush3.bf16.msra.mxu1 %v1027_v19  ;;  %917 = vmatprep.subr.bf16.mxu0 %v1028_v20  ;;  %v1067_v61 = vld [vmem:[%s1355_s1 + $0x190] sm:$0xff]   ;;  %v1071_v1 = vld [vmem:[%s1355_s1 + $0x188] sm:$0xff]   ;;  %v1072_v2 = vld [vmem:[%s1355_s1 + $0x140] sm:$0xff]  }
  0x16   :  { %939 = vmatprep.subr.bf16.mxu1 %v1029_v21  ;;  %v1073_v3 = vld [vmem:[%s1355_s1 + $0x1c0] sm:$0xff]   ;;  %v24_v6 = vld [vmem:[%s1354_s0 + $0x10] sm:$0xff]  ;;  %v25_v9 = vld [vmem:[%s1354_s0 + $0x18] sm:$0xff] }
  0x17   :  { %v1074_v4 = vld [vmem:[%s1355_s1 + $0x100] sm:$0xff]   ;;  %v837_v7 = vcombine.low %v24_v6, %v24_v6  ;;  %v838_v8 = vcombine.high %v24_v6, %v24_v6 }
  0x18   :  { %918 = vmatpush3.bf16.msra.mxu0 %v1030_v22  ;;  %v1075_v5 = vld [vmem:[%s1355_s1 + $0x180] sm:$0xff]  }
  0x19   :  { %940 = vmatpush3.bf16.msra.mxu1 %v1031_v23  ;;  %919 = vmatprep.subr.bf16.mxu0 %v1032_v24 }
  0x1a   :  { %941 = vmatprep.subr.bf16.mxu1 %v1033_v25 }
  0x1c   :  { %920 = vmatpush3.bf16.msra.mxu0 %v1034_v26 }
  0x1d   :  { %942 = vmatpush3.bf16.msra.mxu1 %v1035_v27  ;;  %921 = vmatprep.subr.bf16.mxu0 %v1036_v28 }
  0x1e   :  { %943 = vmatprep.subr.bf16.mxu1 %v1037_v29 }
  0x20   :  { %922 = vmatpush3.bf16.msra.mxu0 %v1038_v30 }
  0x21   :  { %944 = vmatpush3.bf16.msra.mxu1 %v1039_v31  ;;  %951 = vmatprep.subr.bf16.mxu0 %v1044_v38 }
  0x22   :  { %973 = vmatprep.subr.bf16.mxu1 %v1045_v39 }
  0x23   :  { %606 = vmatmul.mubr.bf16.vlgmr.msra.gmra.mxu0 %v833_v34 }
  0x24   :  { %646 = vmatmul.mubr.bf16.vlgmr.msra.gmra.mxu1 %v835_v36  ;;  %952 = vmatpush3.bf16.msra.mxu0 %v1046_v40 }
  0x25   :  { %974 = vmatpush3.bf16.msra.mxu1 %v1047_v41  ;;  %953 = vmatprep.subr.bf16.mxu0 %v1048_v42 }
  0x26   :  { %975 = vmatprep.subr.bf16.mxu1 %v1049_v43 }
  0x28   :  { %954 = vmatpush3.bf16.msra.mxu0 %v1050_v44 }
  0x29   :  { %976 = vmatpush3.bf16.msra.mxu1 %v1051_v45  ;;  %955 = vmatprep.subr.bf16.mxu0 %v1052_v46 }
  0x2a   :  { %977 = vmatprep.subr.bf16.mxu1 %v1053_v47 }
  0x2c   :  { %956 = vmatpush3.bf16.msra.mxu0 %v1054_v48 }
  0x2d   :  { %978 = vmatpush3.bf16.msra.mxu1 %v1055_v49  ;;  %957 = vmatprep.subr.bf16.mxu0 %v1056_v50 }
  0x2e   :  { %979 = vmatprep.subr.bf16.mxu1 %v1057_v51 }
  0x30   :  { %958 = vmatpush3.bf16.msra.mxu0 %v1058_v52 }
  0x31   :  { %980 = vmatpush3.bf16.msra.mxu1 %v1059_v53  ;;  %959 = vmatprep.subr.bf16.mxu0 %v1060_v54 }
  0x32   :  { %981 = vmatprep.subr.bf16.mxu1 %v1061_v55 }
  0x34   :  { %960 = vmatpush3.bf16.msra.mxu0 %v1062_v56 }
  0x35   :  { %982 = vmatpush3.bf16.msra.mxu1 %v1063_v57  ;;  %961 = vmatprep.subr.bf16.mxu0 %v1064_v58 }
  0x36   :  { %983 = vmatprep.subr.bf16.mxu1 %v1065_v59 }
  0x38   :  { %962 = vmatpush3.bf16.msra.mxu0 %v1066_v60 }
  0x39   :  { %984 = vmatpush3.bf16.msra.mxu1 %v1067_v61  ;;  %963 = vmatprep.subr.bf16.mxu0 %v1068_v62 }
  0x3a   :  { %985 = vmatprep.subr.bf16.mxu1 %v1069_v63 }
  0x3c   :  { %964 = vmatpush3.bf16.msra.mxu0 %v1070_v0 }
  0x3d   :  { %986 = vmatpush3.bf16.msra.mxu1 %v1071_v1  ;;  %965 = vmatprep.subr.bf16.mxu0 %v1072_v2 }
  0x3e   :  { %987 = vmatprep.subr.bf16.mxu1 %v1073_v3 }
  0x3f   :  { %10 = vsyncpa [#allocation3], 0  ;;  %v839_v10 = vcombine.low %v25_v9, %v25_v9  ;;  %v840_v11 = vcombine.high %v25_v9, %v25_v9  ;;  %685 = vmatprep.mubr.bf16.mxu0 %v838_v8  ;;  %v1102_v12 = vmov 0.0   ;;  %v735_v13 = vld [vmem:[%s1357_s3 + $0x8] sm:$0xff]  ;;  %v734_v14 = vld [vmem:[%s1357_s3] sm:$0xff]  ;;  %vm1103_vm0 = vmmov 0  }
  0x40   :  { %966 = vmatpush3.bf16.msra.mxu0 %v1074_v4  ;;  %v832_v24 = vld [vmem:[%s1356_s2] ss:$0 sm:$0xff]  ;;  %vm743_vm1 = vcmask 130048   ;;  %s1104_s8 = smov [#allocation2]  }
  0x41   :  { %988 = vmatpush3.bf16.msra.mxu1 %v1075_v5  ;;  %725 = vmatprep.mubr.bf16.mxu1 %v840_v11  ;;  %v905_v41 = vld [vmem:[%s1358_s4] ss:$0 sm:$0xff]  ;;  %s824_s9 = sshll.u32 %s1104_s8, 4  ;;  %s825_s9 = int_to_ptr.vmem [resolvable:$true] %s824_s9 }
  0x42   :  { %998 = vmatprep.subr.mxu0 %v1102_v12  ;;  %s1080_s10 = scalar_lea.vmem %s825_s9, 128  ;;  %p1085_p1 = scmp.lt.s32.totalorder %s825_s9, %s825_s9 }
  0x43   :  { %686 = vmatmul.mubr.bf16.vlgmr.msra.gmra.mxu0 %v837_v7  ;;  %p1081_p0 = scmp.ne.s32.totalorder %s825_s9, %s1080_s10  ;;  %p1086_p2 = scmp.lt.s32.totalorder %s1080_s10, %s1080_s10 }
  0x44   :  { %726 = vmatmul.mubr.bf16.vlgmr.msra.gmra.mxu1 %v839_v10  ;;  %999 = vmatpush3.msra.mxu0 %v735_v13 }
  0x45   :  { %1000 = vmatprep.subr.mxu0 %v1102_v12  ;;  %1002 = vmatprep.mubr.msk.f32.mxu0 %vm1103_vm0, %v1102_v12  ;;  %p1087_p3 = por %p1086_p2, %p1085_p1 }
  0x46   :  { %1001 = vmatpush3.msra.mxu0 %v734_v14 }
  0x47   :  { %p1088_p4 = pnand %p1087_p3, %p1081_p0 }
  0xe3   :  { %v923_v15 = vpop.f32.mrf.mxu0 }
  0xe4   :  { %v945_v16 = vpop.f32.mrf.mxu1 }
  0xe5   :  { %v924_v17 = vpop.f32.mrf.mxu0 }
  0xe6   :  { %v946_v18 = vpop.f32.mrf.mxu1  ;;  %v925_v23 = vadd.f32 %v924_v17, %v923_v15 }
  0xe7   :  { %v926_v19 = vpop.f32.mrf.mxu0  ;;  %v947_v26 = vadd.f32 %v946_v18, %v945_v16 }
  0xe8   :  { %v948_v20 = vpop.f32.mrf.mxu1  ;;  %v608_v25 = vadd.f32 %v925_v23, %v832_v24 }
  0xe9   :  { %v927_v21 = vpop.f32.mrf.mxu0 }
  0xea   :  { %v949_v22 = vpop.f32.mrf.mxu1  ;;  %v648_v31 = vadd.f32 %v947_v26, %v608_v25 }
 0x103   :  { %v967_v27 = vpop.f32.mrf.mxu0 }
 0x104   :  { %v989_v28 = vpop.f32.mrf.mxu1 }
 0x105   :  { %v968_v29 = vpop.f32.mrf.mxu0 }
 0x106   :  { %v990_v30 = vpop.f32.mrf.mxu1  ;;  %v969_v32 = vadd.f32 %v968_v29, %v967_v27 }
 0x107   :  { %v970_v33 = vpop.f32.mrf.mxu0  ;;  %v991_v36 = vadd.f32 %v990_v30, %v989_v28 }
 0x108   :  { %v992_v34 = vpop.f32.mrf.mxu1  ;;  %v688_v35 = vadd.f32 %v969_v32, %v648_v31 }
 0x109   :  { %v971_v37 = vpop.f32.mrf.mxu0 }
 0x10a   :  { %v993_v38 = vpop.f32.mrf.mxu1  ;;  %v728_v39 = vadd.f32 %v991_v36, %v688_v35 }
 0x10c   :  { %v733_v40 = vmax.f32 %v728_v39, 0.0 }
 0x10e   :  { %1003 = vmatmul.mubr.msk.f32.vlgmr.msra.gmra.mxu0 %vm743_vm1, %v733_v40 }
 0x1ce   :  { %v813_v42 = vpop.f32.mrf.mxu0 }
 0x1cf   :  { %v814_v43 = vadd.f32 %v905_v41, %v813_v42 }
 0x1d0   :  { %v1004_v44 = vpop.f32.mrf.mxu0 }
 0x1d1   :  { %817 = vst [vmem:[#allocation2] sm:$0xff] %v814_v43 }
 0x1d2   :  { %1091 = shalt.err (!%p1088_p4)
}
 0x1d3   :  { %827 = dma.vmem_to_hbm [thread:$0]  %s825_s9, 128, %s1359_s5, [#allocation3]  }
 0x1d4   :  { %1100 = dma.done.wait [#allocation3], 128  }
 0x1d5   :  { %1101 = vsyncadd [#allocation3], 4294967168 }
 0x1d6   :  { %831 = vsyncpa [#allocation3], 1 }

</bundles_post_ra>
